<compile_context>
chip_gen: v5e
topology: v5e:2x2
jax: 0.10.0
libtpu: 0.0.40
codegen_flags: <defaults>
</compile_context>

<pallas_src>
import jax
import jax.numpy as jnp
from jax.experimental import pallas as pl
from jax.experimental.pallas import tpu as pltpu

IN_FEATURES = 10
OUT_FEATURES = 5
LANE = 128


def linear_relu_kernel(xt_ref, w_ref, b_ref, ot_ref):
    # xt_ref: (IN, TB)   -- batch on the lane axis (lane-dense loads)
    # w_ref : (OUT, IN)  -- resident in VMEM across the whole grid
    # b_ref : (OUT, 1)   -- resident in VMEM across the whole grid
    # ot_ref: (OUT, TB)  -- lane-dense stores (unmasked vst)
    x = xt_ref[...]
    w = w_ref[...]
    # K=10 contraction as VPU broadcast-FMAs; two accumulators for ILP so the
    # adds don't form a single 10-deep dependency chain on one VALU.
    acc0 = w[:, 0:1] * x[0:1, :] + b_ref[...]
    acc1 = w[:, 1:2] * x[1:2, :]
    for k in range(2, IN_FEATURES, 2):
        acc0 = acc0 + w[:, k:k + 1] * x[k:k + 1, :]
        acc1 = acc1 + w[:, k + 1:k + 2] * x[k + 1:k + 2, :]
    ot_ref[...] = jnp.maximum(acc0 + acc1, 0.0).astype(ot_ref.dtype)


def linear_relu(x, w, b):
    """relu(x @ w.T + b); x: (B, IN), w: (OUT, IN) [PyTorch layout], b: (OUT,)."""
    B, K = x.shape
    N, K2 = w.shape
    assert K == K2 == IN_FEATURES and N == OUT_FEATURES

    # Pad batch up to a lane multiple so loads AND stores are lane-dense.
    b_pad = pl.cdiv(B, LANE) * LANE
    # Batch tile: large enough to amortize per-step overhead; >= 2 tiles when
    # possible so the "parallel" axis can shard across v7x's 2 TensorCores.
    tb = b_pad
    for cand in (512, 256, 128):
        if b_pad % cand == 0 and b_pad // cand >= 2:
            tb = cand
            break

    xt = jnp.pad(x, ((0, b_pad - B), (0, 0))).T      # (IN, b_pad), batch on lanes
    b2 = b.reshape(N, 1)

    out_t = pl.pallas_call(
        linear_relu_kernel,
        out_shape=jax.ShapeDtypeStruct((N, b_pad), x.dtype),
        grid=(b_pad // tb,),
        in_specs=[
            pl.BlockSpec((K, tb), lambda i: (0, i)),   # x tile, pipelined over batch
            pl.BlockSpec((N, K), lambda i: (0, 0)),    # weights: loaded once, resident
            pl.BlockSpec((N, 1), lambda i: (0, 0)),    # bias: loaded once, resident
        ],
        out_specs=pl.BlockSpec((N, tb), lambda i: (0, i)),
        compiler_params=pltpu.CompilerParams(
            dimension_semantics=("parallel",)),
    )(xt, w, b2)

    return out_t.T[:B, :]                              # back to (B, OUT)


def reference(x, w, b):
    return jnp.maximum(x @ w.T + b, 0.0)


if __name__ == "__main__":
    key = jax.random.PRNGKey(0)
    kx, kw, kb = jax.random.split(key, 3)

    batch = 8   # small example batch; wrapper pads to one 128-lane tile
    x = jax.random.normal(kx, (batch, IN_FEATURES), dtype=jnp.float32)

    # Deterministic parameter init (mimics nn.Linear's uniform init bounds),
    # weight kept in PyTorch (out_features, in_features) layout.
    bound = 1.0 / (IN_FEATURES ** 0.5)
    w = jax.random.uniform(kw, (OUT_FEATURES, IN_FEATURES),
                           minval=-bound, maxval=bound, dtype=jnp.float32)
    b = jax.random.uniform(kb, (OUT_FEATURES,),
                           minval=-bound, maxval=bound, dtype=jnp.float32)

    out = jax.block_until_ready(linear_relu(x, w, b))

    ref = reference(x, w, b)
    assert out.shape == (batch, OUT_FEATURES)
    assert jnp.allclose(out, ref, atol=1e-5, rtol=1e-5)
    print("KERNEL_OK")
</pallas_src>

<mosaic_0001>
module attributes {stable_mosaic.version = 11 : i64} {
  func.func @linear_relu_kernel(%arg0: i32, %arg1: memref<10x128xf32, #tpu.memory_space<vmem>>, %arg2: memref<5x10xf32, #tpu.memory_space<vmem>>, %arg3: memref<5x1xf32, #tpu.memory_space<vmem>>, %arg4: memref<5x128xf32, #tpu.memory_space<vmem>>) attributes {dimension_semantics = [#tpu.dimension_semantics<parallel>], iteration_bounds = array<i64: 1>, scalar_prefetch = 0 : i64, scratch_operands = 0 : i64, tpu.core_type = #tpu.core_type<tc>, window_params = [{transform_indices = @transform_0, window_bounds = array<i64: 10, 128>}, {pipeline_mode = #tpu.pipeline_mode<synchronous>, transform_indices = @transform_1, window_bounds = array<i64: 5, 10>}, {pipeline_mode = #tpu.pipeline_mode<synchronous>, transform_indices = @transform_2, window_bounds = array<i64: 5, 1>}, {transform_indices = @transform_3, window_bounds = array<i64: 5, 128>}]} {
    %c0 = arith.constant 0 : index
    %c0_0 = arith.constant 0 : index
    %0 = vector.load %arg1[%c0, %c0_0] : memref<10x128xf32, #tpu.memory_space<vmem>>, vector<10x128xf32>
    %c0_1 = arith.constant 0 : index
    %c0_2 = arith.constant 0 : index
    %1 = vector.load %arg2[%c0_1, %c0_2] : memref<5x10xf32, #tpu.memory_space<vmem>>, vector<5x10xf32>
    %2 = vector.extract_strided_slice %1 {offsets = [0, 0], sizes = [5, 1], strides = [1, 1]} : vector<5x10xf32> to vector<5x1xf32>
    %3 = vector.extract_strided_slice %0 {offsets = [0, 0], sizes = [1, 128], strides = [1, 1]} : vector<10x128xf32> to vector<1x128xf32>
    %4 = vector.broadcast %2 : vector<5x1xf32> to vector<5x128xf32>
    %5 = vector.broadcast %3 : vector<1x128xf32> to vector<5x128xf32>
    %6 = arith.mulf %4, %5 : vector<5x128xf32>
    %c0_3 = arith.constant 0 : index
    %c0_4 = arith.constant 0 : index
    %7 = vector.load %arg3[%c0_3, %c0_4] : memref<5x1xf32, #tpu.memory_space<vmem>>, vector<5x1xf32>
    %8 = vector.broadcast %7 : vector<5x1xf32> to vector<5x128xf32>
    %9 = arith.addf %6, %8 : vector<5x128xf32>
    %10 = vector.extract_strided_slice %1 {offsets = [0, 1], sizes = [5, 1], strides = [1, 1]} : vector<5x10xf32> to vector<5x1xf32>
    %11 = vector.extract_strided_slice %0 {offsets = [1, 0], sizes = [1, 128], strides = [1, 1]} : vector<10x128xf32> to vector<1x128xf32>
    %12 = vector.broadcast %10 : vector<5x1xf32> to vector<5x128xf32>
    %13 = vector.broadcast %11 : vector<1x128xf32> to vector<5x128xf32>
    %14 = arith.mulf %12, %13 : vector<5x128xf32>
    %15 = vector.extract_strided_slice %1 {offsets = [0, 2], sizes = [5, 1], strides = [1, 1]} : vector<5x10xf32> to vector<5x1xf32>
    %16 = vector.extract_strided_slice %0 {offsets = [2, 0], sizes = [1, 128], strides = [1, 1]} : vector<10x128xf32> to vector<1x128xf32>
    %17 = vector.broadcast %15 : vector<5x1xf32> to vector<5x128xf32>
    %18 = vector.broadcast %16 : vector<1x128xf32> to vector<5x128xf32>
    %19 = arith.mulf %17, %18 : vector<5x128xf32>
    %20 = arith.addf %9, %19 : vector<5x128xf32>
    %21 = vector.extract_strided_slice %1 {offsets = [0, 3], sizes = [5, 1], strides = [1, 1]} : vector<5x10xf32> to vector<5x1xf32>
    %22 = vector.extract_strided_slice %0 {offsets = [3, 0], sizes = [1, 128], strides = [1, 1]} : vector<10x128xf32> to vector<1x128xf32>
    %23 = vector.broadcast %21 : vector<5x1xf32> to vector<5x128xf32>
    %24 = vector.broadcast %22 : vector<1x128xf32> to vector<5x128xf32>
    %25 = arith.mulf %23, %24 : vector<5x128xf32>
    %26 = arith.addf %14, %25 : vector<5x128xf32>
    %27 = vector.extract_strided_slice %1 {offsets = [0, 4], sizes = [5, 1], strides = [1, 1]} : vector<5x10xf32> to vector<5x1xf32>
    %28 = vector.extract_strided_slice %0 {offsets = [4, 0], sizes = [1, 128], strides = [1, 1]} : vector<10x128xf32> to vector<1x128xf32>
    %29 = vector.broadcast %27 : vector<5x1xf32> to vector<5x128xf32>
    %30 = vector.broadcast %28 : vector<1x128xf32> to vector<5x128xf32>
    %31 = arith.mulf %29, %30 : vector<5x128xf32>
    %32 = arith.addf %20, %31 : vector<5x128xf32>
    %33 = vector.extract_strided_slice %1 {offsets = [0, 5], sizes = [5, 1], strides = [1, 1]} : vector<5x10xf32> to vector<5x1xf32>
    %34 = vector.extract_strided_slice %0 {offsets = [5, 0], sizes = [1, 128], strides = [1, 1]} : vector<10x128xf32> to vector<1x128xf32>
    %35 = vector.broadcast %33 : vector<5x1xf32> to vector<5x128xf32>
    %36 = vector.broadcast %34 : vector<1x128xf32> to vector<5x128xf32>
    %37 = arith.mulf %35, %36 : vector<5x128xf32>
    %38 = arith.addf %26, %37 : vector<5x128xf32>
    %39 = vector.extract_strided_slice %1 {offsets = [0, 6], sizes = [5, 1], strides = [1, 1]} : vector<5x10xf32> to vector<5x1xf32>
    %40 = vector.extract_strided_slice %0 {offsets = [6, 0], sizes = [1, 128], strides = [1, 1]} : vector<10x128xf32> to vector<1x128xf32>
    %41 = vector.broadcast %39 : vector<5x1xf32> to vector<5x128xf32>
    %42 = vector.broadcast %40 : vector<1x128xf32> to vector<5x128xf32>
    %43 = arith.mulf %41, %42 : vector<5x128xf32>
    %44 = arith.addf %32, %43 : vector<5x128xf32>
    %45 = vector.extract_strided_slice %1 {offsets = [0, 7], sizes = [5, 1], strides = [1, 1]} : vector<5x10xf32> to vector<5x1xf32>
    %46 = vector.extract_strided_slice %0 {offsets = [7, 0], sizes = [1, 128], strides = [1, 1]} : vector<10x128xf32> to vector<1x128xf32>
    %47 = vector.broadcast %45 : vector<5x1xf32> to vector<5x128xf32>
    %48 = vector.broadcast %46 : vector<1x128xf32> to vector<5x128xf32>
    %49 = arith.mulf %47, %48 : vector<5x128xf32>
    %50 = arith.addf %38, %49 : vector<5x128xf32>
    %51 = vector.extract_strided_slice %1 {offsets = [0, 8], sizes = [5, 1], strides = [1, 1]} : vector<5x10xf32> to vector<5x1xf32>
    %52 = vector.extract_strided_slice %0 {offsets = [8, 0], sizes = [1, 128], strides = [1, 1]} : vector<10x128xf32> to vector<1x128xf32>
    %53 = vector.broadcast %51 : vector<5x1xf32> to vector<5x128xf32>
    %54 = vector.broadcast %52 : vector<1x128xf32> to vector<5x128xf32>
    %55 = arith.mulf %53, %54 : vector<5x128xf32>
    %56 = arith.addf %44, %55 : vector<5x128xf32>
    %57 = vector.extract_strided_slice %1 {offsets = [0, 9], sizes = [5, 1], strides = [1, 1]} : vector<5x10xf32> to vector<5x1xf32>
    %58 = vector.extract_strided_slice %0 {offsets = [9, 0], sizes = [1, 128], strides = [1, 1]} : vector<10x128xf32> to vector<1x128xf32>
    %59 = vector.broadcast %57 : vector<5x1xf32> to vector<5x128xf32>
    %60 = vector.broadcast %58 : vector<1x128xf32> to vector<5x128xf32>
    %61 = arith.mulf %59, %60 : vector<5x128xf32>
    %62 = arith.addf %50, %61 : vector<5x128xf32>
    %63 = arith.addf %56, %62 : vector<5x128xf32>
    %cst = arith.constant 0.000000e+00 : f32
    %64 = vector.broadcast %cst : f32 to vector<5x128xf32>
    %65 = arith.maximumf %63, %64 : vector<5x128xf32>
    %c0_5 = arith.constant 0 : index
    %c0_6 = arith.constant 0 : index
    %66 = vector.load %arg4[%c0_5, %c0_6] : memref<5x128xf32, #tpu.memory_space<vmem>>, vector<5x128xf32>
    tpu.vector_store %arg4[%c0_5, %c0_6], %65 {strides = array<i32>} : memref<5x128xf32, #tpu.memory_space<vmem>>, vector<5x128xf32>,
    return
  }
  func.func @transform_0(%arg0: i32) -> (i32, i32) {
    %c0_i32 = arith.constant 0 : i32
    %c0_i32_0 = arith.constant 0 : i32
    return %c0_i32, %arg0 : i32, i32
  }
  func.func @transform_1(%arg0: i32) -> (i32, i32) {
    %c0_i32 = arith.constant 0 : i32
    %c0_i32_0 = arith.constant 0 : i32
    %c0_i32_1 = arith.constant 0 : i32
    return %c0_i32, %c0_i32_0 : i32, i32
  }
  func.func @transform_2(%arg0: i32) -> (i32, i32) {
    %c0_i32 = arith.constant 0 : i32
    %c0_i32_0 = arith.constant 0 : i32
    %c0_i32_1 = arith.constant 0 : i32
    return %c0_i32, %c0_i32_0 : i32, i32
  }
  func.func @transform_3(%arg0: i32) -> (i32, i32) {
    %c0_i32 = arith.constant 0 : i32
    %c0_i32_0 = arith.constant 0 : i32
    return %c0_i32, %arg0 : i32, i32
  }
}

</mosaic_0001>

<bundles_post_ra>
// kernel: tpu_custom_call.1
= control target key start
LH: loop header
LB: loop body
LE: loop exit
PB: predicated region body
PF: predicated region fallthrough
CT: control target
= control target key end

     0   :  { %8 = vsyncpa [#allocation3], 0  ;;  %s253_s0 = inlined_call_operand.hbm [shape: f32[10,128], index: 0, kind: input, shape index: {}]   ;;  %s254_s1 = inlined_call_operand.vmem [shape: f32[5,10], index: 1, kind: input, shape index: {}]   ;;  %s255_s2 = inlined_call_operand.vmem [shape: f32[5,1], index: 2, kind: input, shape index: {}]   ;;  %s256_s3 = inlined_call_operand.hbm [shape: f32[5,128], index: 3, kind: output, shape index: {}]  }
   0x1   :  { %9 = vsyncpa [#allocation4], 0  ;;  %s14_s14 = sshll.u32 %s253_s0, 4  ;;  %s207_s15 = smov [#allocation2]   ;;  %s15_s14 = int_to_ptr.hbm [resolvable:$true] %s14_s14 }
   0x2   :  { %s16_s16 = sshll.u32 %s207_s15, 4  ;;  %s208_s17 = smov 128   ;;  %s17_s16 = int_to_ptr.vmem [resolvable:$true] %s16_s16 }
   0x3   :  { %s209_s18 = smov 8  }
   0x4   :  { %22 = dma.hbm_to_vmem [thread:$0]  %s15_s14, 256, %s17_s16, [#allocation3], %s208_s17, %s208_s17, %s209_s18  }
   0x5   :  { %203 = dma.done.wait [#allocation3], 256  }
   0x6   :  { %204 = vsyncadd [#allocation3], 4294967040  ;;  %v210_v0 = vmov 1   ;;  %v211_v1 = vmov 0   ;;  %v212_v2 = vmov 3   ;;  %v213_v5 = vmov 2  }
   0x7   :  { %145 = vset.pattern.permute.xlu1 %v210_v0  ;;  %144 = vset.pattern.permute.xlu0 %v211_v1  ;;  %v33_v3 = vld [vmem:[%s254_s1] sm:$0x1f]  ;;  %v214_v6 = vmov 4   ;;  %v215_v7 = vmov 5   ;;  %v216_v8 = vmov 6   ;;  %v217_v9 = vmov 7  }
   0x8   :  { %147 = vset.pattern.permute.xlu2 %v212_v2  ;;  %49 = vperm.xlu1 %145, %v33_v3   ;;  %v41_v4 = vld [vmem:[%s255_s2] sm:$0x1f]  ;;  %v218_v10 = vmov 9   ;;  %v219_v11 = vmov 8   ;;  %v32_v34 = vld [vmem:[#allocation2 + $0x8] sm:$0x3] }
   0x9   :  { %36 = vperm.xlu0 %144, %v33_v3   ;;  %62 = vperm.xlu2 %147, %v33_v3   ;;  %v31_v17 = vld [vmem:[#allocation2] sm:$0xff]  ;;  %v107_v41 = vperm.slane %v32_v34, 1  ;;  %v100_v45 = vperm.slane %v32_v34, 0  ;;  %s220_s1 = smov [#allocation5]   ;;  %s120_s24 = sshll.u32 %s256_s3, 4  ;;  %s121_s24 = int_to_ptr.hbm [resolvable:$true] %s120_s24 }
   0xa   :  { %v39_v19 = vperm.slane %v31_v17, 0  ;;  %v65_v20 = vperm.slane %v31_v17, 3  ;;  %v52_v21 = vperm.slane %v31_v17, 1  ;;  %v58_v24 = vperm.slane %v31_v17, 2  ;;  %s118_s2 = sshll.u32 %s220_s1, 4  ;;  %s119_s2 = int_to_ptr.vmem [resolvable:$true] %s118_s2 }
   0xb   :  { %v79_v25 = vperm.slane %v31_v17, 5  ;;  %v93_v31 = vperm.slane %v31_v17, 7  ;;  %v72_v36 = vperm.slane %v31_v17, 4  ;;  %v86_v37 = vperm.slane %v31_v17, 6 }
  0x10   :  { %146 = vset.pattern.permute.xlu1 %v213_v5 }
  0x11   :  { %44 = vperm.xlu0 %144, %v41_v4   ;;  %55 = vperm.xlu1 %146, %v33_v3  }
  0x12   :  { %148 = vset.pattern.permute.xlu2 %v214_v6 }
  0x13   :  { %69 = vperm.xlu2 %148, %v33_v3  }
  0x19   :  { %149 = vset.pattern.permute.xlu0 %v215_v7  ;;  %150 = vset.pattern.permute.xlu1 %v216_v8 }
  0x1a   :  { %76 = vperm.xlu0 %149, %v33_v3   ;;  %83 = vperm.xlu1 %150, %v33_v3  }
  0x1b   :  { %151 = vset.pattern.permute.xlu2 %v217_v9 }
  0x1c   :  { %90 = vperm.xlu2 %151, %v33_v3  }
  0x22   :  { %154 = vset.pattern.permute.xlu0 %v218_v10  ;;  %152 = vset.pattern.permute.xlu1 %v219_v11 }
  0x23   :  { %97 = vperm.xlu1 %152, %v33_v3  }
  0x24   :  { %153 = vset.pattern.permute.xlu2 %v218_v10 }
  0x25   :  { %104 = vperm.xlu2 %153, %v33_v3  }
  0x63   :  { %v63_v12 = vpop.permute.xlu2 %62 }
  0x64   :  { %v66_v26 = vmul.f32 %v65_v20, %v63_v12 }
  0x6d   :  { %v70_v15 = vpop.permute.xlu2 %69 }
  0x6e   :  { %v73_v43 = vmul.f32 %v72_v36, %v70_v15 }
  0x76   :  { %v91_v22 = vpop.permute.xlu2 %90 }
  0x77   :  { %v94_v39 = vmul.f32 %v93_v31, %v91_v22 }
  0x7a   :  { %v50_v13 = vpop.permute.xlu1 %49 }
  0x7b   :  { %v37_v14 = vpop.permute.xlu0 %36  ;;  %v53_v27 = vmul.f32 %v52_v21, %v50_v13 }
  0x7c   :  { %v40_v23 = vmul.f32 %v39_v19, %v37_v14 }
  0x7d   :  { %v67_v35 = vadd.f32 %v66_v26, %v53_v27 }
  0x7f   :  { %v105_v42 = vpop.permute.xlu2 %104 }
  0x80   :  { %v108_v48 = vmul.f32 %v107_v41, %v105_v42 }
  0x83   :  { %v45_v16 = vpop.permute.xlu0 %44  ;;  %v56_v18 = vpop.permute.xlu1 %55 }
  0x84   :  { %v47_v29 = vadd.f32 %v45_v16, %v40_v23  ;;  %v59_v30 = vmul.f32 %v58_v24, %v56_v18 }
  0x86   :  { %v60_v38 = vadd.f32 %v59_v30, %v47_v29 }
  0x88   :  { %v74_v46 = vadd.f32 %v73_v43, %v60_v38 }
  0x8c   :  { %v77_v28 = vpop.permute.xlu0 %76  ;;  %v84_v33 = vpop.permute.xlu1 %83 }
  0x8d   :  { %v80_v32 = vmul.f32 %v79_v25, %v77_v28  ;;  %v87_v44 = vmul.f32 %v86_v37, %v84_v33 }
  0x8f   :  { %v81_v40 = vadd.f32 %v80_v32, %v67_v35  ;;  %v88_v50 = vadd.f32 %v87_v44, %v74_v46 }
  0x91   :  { %v95_v47 = vadd.f32 %v94_v39, %v81_v40 }
  0x93   :  { %v109_v52 = vadd.f32 %v108_v48, %v95_v47 }
  0x95   :  { %v98_v49 = vpop.permute.xlu1 %97 }
  0x96   :  { %v101_v51 = vmul.f32 %v100_v45, %v98_v49 }
  0x98   :  { %v102_v53 = vadd.f32 %v101_v51, %v88_v50 }
  0x9a   :  { %v110_v54 = vadd.f32 %v109_v52, %v102_v53 }
  0x9c   :  { %v111_v55 = vmax.f32 %v110_v54, 0.0 }
  0x9e   :  { %112 = vst [vmem:[#allocation5] sm:$0x1f] %v111_v55 }
  0x9f   :  { %123 = dma.vmem_to_hbm [thread:$0]  %s119_s2, 128, %s121_s24, [#allocation4]  }
  0xa0   :  { %205 = dma.done.wait [#allocation4], 128  }
  0xa1   :  { %206 = vsyncadd [#allocation4], 4294967168 }
  0xa2   :  { %128 = vsyncpa [#allocation3], 1 }
  0xa3   :  { %129 = vsyncpa [#allocation4], 1 }

</bundles_post_ra>
